<compile_context>
chip_gen: v6e
topology: v6e:2x2x1
jax: 0.10.0
libtpu: 0.0.40
codegen_flags: <defaults>
</compile_context>

<pallas_src>
import jax
import jax.numpy as jnp
from jax.experimental import pallas as pl
from jax.experimental.pallas import tpu as pltpu


def mlp_classifier_kernel(alpha_ref, x_ref, w1_ref, b1_ref, w2_ref, b2_ref,
                          w3_ref, b3_ref, out_ref):
    a1 = alpha_ref[0, 0]          # PReLU alphas (scalar, PyTorch default 0.25)
    a2 = alpha_ref[0, 1]

    x = x_ref[...]                # (TB, F)
    w1 = w1_ref[...]              # (F, H)
    feat_dim = w1.shape[0]

    # ---- layer1: Linear(F -> H) as a VPU outer product (F tiny, e.g. 2). ----
    # b1 is folded into the accumulator init (one fewer full-width VPU add).
    h = b1_ref[...] + x[:, 0:1] * w1[0:1, :]
    for f in range(1, feat_dim):                  # unrolled at trace time
        h = h + x[:, f:f + 1] * w1[f:f + 1, :]
    h = jnp.where(h >= 0.0, h, a1 * h)            # PReLU

    # ---- linearblock[0]: Linear(H -> H) on the MXU, f32 accumulation --------
    h = jnp.dot(h, w2_ref[...], preferred_element_type=jnp.float32) + b2_ref[...]
    h = jnp.where(h >= 0.0, h, a2 * h)            # PReLU

    # ---- last_layer: Linear(H -> C_pad); padded class lanes have bias -1e30 -
    logits = jnp.dot(h, w3_ref[...], preferred_element_type=jnp.float32) + b3_ref[...]

    # ---- softmax over the (padded) class axis; padded lanes -> exp == 0 -----
    m = jnp.max(logits, axis=-1, keepdims=True)
    e = jnp.exp(logits - m)
    s = jnp.sum(e, axis=-1, keepdims=True)
    inv = pl.reciprocal(s, approx=True)           # EUP estimate
    inv = inv * (2.0 - s * inv)                   # one Newton step -> ~f32 exact
    out_ref[...] = (e * inv).astype(out_ref.dtype)


def _pick_batch_tile(B, block_b):
    """Largest-sensible batch tile.

    - Amortize ~0.35 us/step grid overhead with big tiles (default cap 512).
    - Keep >= 2 grid steps when B is large enough so the ("parallel",) axis
      splits across v7x's two TensorCores and the pipeline has work to overlap.
    - Tile rows must be a multiple of 8 (sublane) or equal to B.
    """
    if B <= block_b:
        if B >= 64 and B % 16 == 0:
            return B // 2                  # 2 grid steps, both TCs busy on v7x
        return B                           # single full-B tile
    tb = (min(block_b, B) // 8) * 8
    return max(8, tb)


def prepare_params(params, *, lanes=128):
    """One-time preprocessing: pad the class axis lane-dense and pack alphas.

    Padded weight columns are zero and padded bias lanes are -1e30 so exp()
    kills them and the softmax denominator stays correct.  Done once here, not
    per forward call.
    """
    H, C = params["w3"].shape
    c_pad = max(lanes, pl.cdiv(C, lanes) * lanes)
    w3p = jnp.zeros((H, c_pad), jnp.float32).at[:, :C].set(params["w3"])
    b3p = jnp.full((1, c_pad), -1e30, jnp.float32).at[:, :C].set(params["b3"])
    alphas = jnp.reshape(jnp.concatenate([params["a1"], params["a2"]]), (1, 2))
    return {
        "w1": params["w1"], "b1": params["b1"],
        "w2": params["w2"], "b2": params["b2"],
        "w3p": w3p, "b3p": b3p,
        "alphas": alphas,
        "num_class": C,                    # plain Python int (used for the final slice)
    }


def mlp_classifier(feature, prepped, *, block_b=512):
    B, F = feature.shape
    H = prepped["w1"].shape[1]
    c_pad = prepped["w3p"].shape[1]
    C = prepped["num_class"]

    tb = _pick_batch_tile(B, block_b)
    grid = (pl.cdiv(B, tb),)
    # Note: if B % tb != 0 the last partial tile softmaxes garbage rows
    # internally (writeback is masked so results are correct); prefer B % 8 == 0.

    # Advisory cost estimate + right-sized scoped VMEM limit.
    flops = 2 * B * (F * H + H * H + H * c_pad) + 6 * B * c_pad
    bytes_accessed = 4 * (B * F + F * H + H * H + H * c_pad + 2 * H + c_pad
                          + B * c_pad + 2)
    transcendentals = B * c_pad
    resident = 4 * (F * H + H * H + H * c_pad + 2 * H + c_pad)      # weights/biases
    per_step = 4 * (2 * tb * F + 2 * tb * c_pad + 4 * tb * H)       # tiles + activations
    vmem_limit = int(min(max(2 * (resident + per_step), 8 * 1024 * 1024),
                         64 * 1024 * 1024))

    out = pl.pallas_call(
        mlp_classifier_kernel,
        grid=grid,
        out_shape=jax.ShapeDtypeStruct((B, c_pad), jnp.float32),
        in_specs=[
            pl.BlockSpec((1, 2), lambda i: (0, 0),
                         memory_space=pltpu.MemorySpace.SMEM),      # PReLU alphas
            pl.BlockSpec((tb, F), lambda i: (i, 0)),                # x batch tile
            pl.BlockSpec((F, H), lambda i: (0, 0)),                 # w1 (resident)
            pl.BlockSpec((1, H), lambda i: (0, 0)),                 # b1
            pl.BlockSpec((H, H), lambda i: (0, 0)),                 # w2 (resident)
            pl.BlockSpec((1, H), lambda i: (0, 0)),                 # b2
            pl.BlockSpec((H, c_pad), lambda i: (0, 0)),             # w3 (padded, resident)
            pl.BlockSpec((1, c_pad), lambda i: (0, 0)),             # b3 (padded)
        ],
        out_specs=pl.BlockSpec((tb, c_pad), lambda i: (i, 0)),
        compiler_params=pltpu.CompilerParams(
            dimension_semantics=("parallel",),
            vmem_limit_bytes=vmem_limit),
        cost_estimate=pl.CostEstimate(flops=flops,
                                      bytes_accessed=bytes_accessed,
                                      transcendentals=transcendentals),
    )(prepped["alphas"], feature, prepped["w1"], prepped["b1"],
      prepped["w2"], prepped["b2"], prepped["w3p"], prepped["b3p"])

    return out[:, :C]


def init_params(key, feat_dim, hidden_dim, num_class):
    """Deterministic init mimicking PyTorch nn.Linear default (uniform +/- 1/sqrt(fan_in))."""
    def linear(k, fan_in, fan_out):
        kw, kb = jax.random.split(k)
        bound = 1.0 / jnp.sqrt(fan_in)
        w = jax.random.uniform(kw, (fan_in, fan_out), jnp.float32, -bound, bound)
        b = jax.random.uniform(kb, (1, fan_out), jnp.float32, -bound, bound)
        return w, b

    k1, k2, k3 = jax.random.split(key, 3)
    w1, b1 = linear(k1, feat_dim, hidden_dim)
    w2, b2 = linear(k2, hidden_dim, hidden_dim)
    w3, b3 = linear(k3, hidden_dim, num_class)
    return {
        "w1": w1, "b1": b1,
        "w2": w2, "b2": b2,
        "w3": w3, "b3": b3,
        # nn.PReLU() default: num_parameters=1, init=0.25
        "a1": jnp.array([0.25], jnp.float32),
        "a2": jnp.array([0.25], jnp.float32),
    }


def reference_forward(feature, p):
    prelu = lambda x, a: jnp.where(x >= 0.0, x, a * x)
    # layer1 as an explicit outer-product FMA (mirrors the kernel's exact-f32 VPU path)
    h = p["b1"] + feature[:, 0:1] * p["w1"][0:1, :]
    for f in range(1, feature.shape[1]):
        h = h + feature[:, f:f + 1] * p["w1"][f:f + 1, :]
    h = prelu(h, p["a1"][0])
    h = prelu(h @ p["w2"] + p["b2"], p["a2"][0])
    logits = h @ p["w3"] + p["b3"]
    return jax.nn.softmax(logits, axis=1)


if __name__ == "__main__":
    # MLPClassifier(feat_dim=2, num_class=4, hidden_dim=128, num_layer=1);
    # batch=256 -> the tile picker chooses tb=128 / grid=2 so both v7x
    # TensorCores get a tile while weights stay VMEM-resident.
    B, FEAT, HIDDEN, NUM_CLASS = 256, 2, 128, 4

    key = jax.random.PRNGKey(0)
    k_feat, k_params, k_lbl = jax.random.split(key, 3)

    feature = jax.random.normal(k_feat, (B, FEAT), jnp.float32)
    source_label = jax.random.randint(k_lbl, (B,), 0, NUM_CLASS)  # unused, per forward()
    del source_label

    params = init_params(k_params, FEAT, HIDDEN, NUM_CLASS)
    prepped = prepare_params(params)      # one-time padding / alpha packing

    fwd = jax.jit(lambda f: mlp_classifier(f, prepped))

    probs = fwd(feature)
    probs = jax.block_until_ready(probs)

    ref = reference_forward(feature, params)
    assert probs.shape == (B, NUM_CLASS)
    assert jnp.allclose(jnp.sum(probs, axis=1), 1.0, atol=1e-5)
    assert jnp.allclose(probs, ref, atol=1e-5, rtol=1e-5), \
        float(jnp.max(jnp.abs(probs - ref)))

    print("KERNEL_OK")
</pallas_src>

<mosaic_0001>
module attributes {stable_mosaic.version = 11 : i64} {
  func.func @mlp_classifier_kernel(%arg0: i32, %arg1: memref<1x2xf32, #tpu.memory_space<smem>>, %arg2: memref<128x2xf32, #tpu.memory_space<vmem>>, %arg3: memref<2x128xf32, #tpu.memory_space<vmem>>, %arg4: memref<1x128xf32, #tpu.memory_space<vmem>>, %arg5: memref<128x128xf32, #tpu.memory_space<vmem>>, %arg6: memref<1x128xf32, #tpu.memory_space<vmem>>, %arg7: memref<128x128xf32, #tpu.memory_space<vmem>>, %arg8: memref<1x128xf32, #tpu.memory_space<vmem>>, %arg9: memref<128x128xf32, #tpu.memory_space<vmem>>) attributes {dimension_semantics = [#tpu.dimension_semantics<parallel>], iteration_bounds = array<i64: 2>, scalar_prefetch = 0 : i64, scratch_operands = 0 : i64, tpu.core_type = #tpu.core_type<tc>, window_params = [{transform_indices = @transform_0, window_bounds = array<i64: 1, 2>}, {transform_indices = @transform_1, window_bounds = array<i64: 128, 2>}, {pipeline_mode = #tpu.pipeline_mode<synchronous>, transform_indices = @transform_2, window_bounds = array<i64: 2, 128>}, {pipeline_mode = #tpu.pipeline_mode<synchronous>, transform_indices = @transform_3, window_bounds = array<i64: 1, 128>}, {pipeline_mode = #tpu.pipeline_mode<synchronous>, transform_indices = @transform_4, window_bounds = array<i64: 128, 128>}, {pipeline_mode = #tpu.pipeline_mode<synchronous>, transform_indices = @transform_5, window_bounds = array<i64: 1, 128>}, {pipeline_mode = #tpu.pipeline_mode<synchronous>, transform_indices = @transform_6, window_bounds = array<i64: 128, 128>}, {pipeline_mode = #tpu.pipeline_mode<synchronous>, transform_indices = @transform_7, window_bounds = array<i64: 1, 128>}, {transform_indices = @transform_8, window_bounds = array<i64: 128, 128>}]} {
    %c0 = arith.constant 0 : index
    %c0_0 = arith.constant 0 : index
    %0 = memref.load %arg1[%c0, %c0_0] : memref<1x2xf32, #tpu.memory_space<smem>>
    %c0_1 = arith.constant 0 : index
    %c1 = arith.constant 1 : index
    %1 = memref.load %arg1[%c0_1, %c1] : memref<1x2xf32, #tpu.memory_space<smem>>
    %c0_2 = arith.constant 0 : index
    %c0_3 = arith.constant 0 : index
    %2 = vector.load %arg2[%c0_2, %c0_3] : memref<128x2xf32, #tpu.memory_space<vmem>>, vector<128x2xf32>
    %c0_4 = arith.constant 0 : index
    %c0_5 = arith.constant 0 : index
    %3 = vector.load %arg3[%c0_4, %c0_5] : memref<2x128xf32, #tpu.memory_space<vmem>>, vector<2x128xf32>
    %c0_6 = arith.constant 0 : index
    %c0_7 = arith.constant 0 : index
    %4 = vector.load %arg4[%c0_6, %c0_7] : memref<1x128xf32, #tpu.memory_space<vmem>>, vector<1x128xf32>
    %5 = vector.extract_strided_slice %2 {offsets = [0, 0], sizes = [128, 1], strides = [1, 1]} : vector<128x2xf32> to vector<128x1xf32>
    %6 = vector.extract_strided_slice %3 {offsets = [0, 0], sizes = [1, 128], strides = [1, 1]} : vector<2x128xf32> to vector<1x128xf32>
    %7 = vector.broadcast %5 : vector<128x1xf32> to vector<128x128xf32>
    %8 = vector.broadcast %6 : vector<1x128xf32> to vector<128x128xf32>
    %9 = arith.mulf %7, %8 : vector<128x128xf32>
    %10 = vector.broadcast %4 : vector<1x128xf32> to vector<128x128xf32>
    %11 = arith.addf %10, %9 : vector<128x128xf32>
    %12 = vector.extract_strided_slice %2 {offsets = [0, 1], sizes = [128, 1], strides = [1, 1]} : vector<128x2xf32> to vector<128x1xf32>
    %13 = vector.extract_strided_slice %3 {offsets = [1, 0], sizes = [1, 128], strides = [1, 1]} : vector<2x128xf32> to vector<1x128xf32>
    %14 = vector.broadcast %12 : vector<128x1xf32> to vector<128x128xf32>
    %15 = vector.broadcast %13 : vector<1x128xf32> to vector<128x128xf32>
    %16 = arith.mulf %14, %15 : vector<128x128xf32>
    %17 = arith.addf %11, %16 : vector<128x128xf32>
    %cst = arith.constant 0.000000e+00 : f32
    %18 = vector.broadcast %cst : f32 to vector<128x128xf32>
    %19 = arith.cmpf oge, %17, %18 : vector<128x128xf32>
    %20 = vector.broadcast %0 : f32 to vector<128x128xf32>
    %21 = arith.mulf %20, %17 : vector<128x128xf32>
    %22 = arith.select %19, %17, %21 : vector<128x128xi1>, vector<128x128xf32>
    %c0_8 = arith.constant 0 : index
    %c0_9 = arith.constant 0 : index
    %23 = vector.load %arg5[%c0_8, %c0_9] : memref<128x128xf32, #tpu.memory_space<vmem>>, vector<128x128xf32>
    %cst_10 = arith.constant dense<0.000000e+00> : vector<128x128xf32>
    %24 = tpu.matmul %22, %23, %cst_10 {dimension_numbers = #tpu.dot_dimension_numbers<[1], [0], [0], [1], [0, 0, 1, 1], [], []>} : vector<128x128xf32>, vector<128x128xf32>, vector<128x128xf32> -> vector<128x128xf32>
    %c0_11 = arith.constant 0 : index
    %c0_12 = arith.constant 0 : index
    %25 = vector.load %arg6[%c0_11, %c0_12] : memref<1x128xf32, #tpu.memory_space<vmem>>, vector<1x128xf32>
    %26 = vector.broadcast %25 : vector<1x128xf32> to vector<128x128xf32>
    %27 = arith.addf %24, %26 : vector<128x128xf32>
    %cst_13 = arith.constant 0.000000e+00 : f32
    %28 = vector.broadcast %cst_13 : f32 to vector<128x128xf32>
    %29 = arith.cmpf oge, %27, %28 : vector<128x128xf32>
    %30 = vector.broadcast %1 : f32 to vector<128x128xf32>
    %31 = arith.mulf %30, %27 : vector<128x128xf32>
    %32 = arith.select %29, %27, %31 : vector<128x128xi1>, vector<128x128xf32>
    %c0_14 = arith.constant 0 : index
    %c0_15 = arith.constant 0 : index
    %33 = vector.load %arg7[%c0_14, %c0_15] : memref<128x128xf32, #tpu.memory_space<vmem>>, vector<128x128xf32>
    %cst_16 = arith.constant dense<0.000000e+00> : vector<128x128xf32>
    %34 = tpu.matmul %32, %33, %cst_16 {dimension_numbers = #tpu.dot_dimension_numbers<[1], [0], [0], [1], [0, 0, 1, 1], [], []>} : vector<128x128xf32>, vector<128x128xf32>, vector<128x128xf32> -> vector<128x128xf32>
    %c0_17 = arith.constant 0 : index
    %c0_18 = arith.constant 0 : index
    %35 = vector.load %arg8[%c0_17, %c0_18] : memref<1x128xf32, #tpu.memory_space<vmem>>, vector<1x128xf32>
    %36 = vector.broadcast %35 : vector<1x128xf32> to vector<128x128xf32>
    %37 = arith.addf %34, %36 : vector<128x128xf32>
    %cst_19 = arith.constant dense<0xFF800000> : vector<128xf32>
    %38 = vector.multi_reduction <maximumf>, %37, %cst_19 [1] : vector<128x128xf32> to vector<128xf32>
    %39 = vector.shape_cast %38 : vector<128xf32> to vector<128x1xf32>
    %40 = vector.broadcast %39 : vector<128x1xf32> to vector<128x128xf32>
    %41 = arith.subf %37, %40 : vector<128x128xf32>
    %42 = math.exp %41 : vector<128x128xf32>
    %cst_20 = arith.constant dense<0.000000e+00> : vector<128xf32>
    %43 = vector.multi_reduction <add>, %42, %cst_20 [1] : vector<128x128xf32> to vector<128xf32>
    %44 = vector.shape_cast %43 : vector<128xf32> to vector<128x1xf32>
    %45 = tpu.reciprocal %44 {approx = true} : vector<128x1xf32> -> vector<128x1xf32>
    %46 = arith.mulf %44, %45 : vector<128x1xf32>
    %cst_21 = arith.constant 2.000000e+00 : f32
    %47 = vector.broadcast %cst_21 : f32 to vector<128x1xf32>
    %48 = arith.subf %47, %46 : vector<128x1xf32>
    %49 = arith.mulf %45, %48 : vector<128x1xf32>
    %50 = vector.broadcast %49 : vector<128x1xf32> to vector<128x128xf32>
    %51 = arith.mulf %42, %50 : vector<128x128xf32>
    %c0_22 = arith.constant 0 : index
    %c0_23 = arith.constant 0 : index
    %52 = vector.load %arg9[%c0_22, %c0_23] : memref<128x128xf32, #tpu.memory_space<vmem>>, vector<128x128xf32>
    tpu.vector_store %arg9[%c0_22, %c0_23], %51 {strides = array<i32>} : memref<128x128xf32, #tpu.memory_space<vmem>>, vector<128x128xf32>,
    return
  }
  func.func @transform_0(%arg0: i32) -> (i32, i32) {
    %c0_i32 = arith.constant 0 : i32
    %c0_i32_0 = arith.constant 0 : i32
    %c0_i32_1 = arith.constant 0 : i32
    return %c0_i32, %c0_i32_0 : i32, i32
  }
  func.func @transform_1(%arg0: i32) -> (i32, i32) {
    %c0_i32 = arith.constant 0 : i32
    %c0_i32_0 = arith.constant 0 : i32
    return %arg0, %c0_i32 : i32, i32
  }
  func.func @transform_2(%arg0: i32) -> (i32, i32) {
    %c0_i32 = arith.constant 0 : i32
    %c0_i32_0 = arith.constant 0 : i32
    %c0_i32_1 = arith.constant 0 : i32
    return %c0_i32, %c0_i32_0 : i32, i32
  }
  func.func @transform_3(%arg0: i32) -> (i32, i32) {
    %c0_i32 = arith.constant 0 : i32
    %c0_i32_0 = arith.constant 0 : i32
    %c0_i32_1 = arith.constant 0 : i32
    return %c0_i32, %c0_i32_0 : i32, i32
  }
  func.func @transform_4(%arg0: i32) -> (i32, i32) {
    %c0_i32 = arith.constant 0 : i32
    %c0_i32_0 = arith.constant 0 : i32
    %c0_i32_1 = arith.constant 0 : i32
    return %c0_i32, %c0_i32_0 : i32, i32
  }
  func.func @transform_5(%arg0: i32) -> (i32, i32) {
    %c0_i32 = arith.constant 0 : i32
    %c0_i32_0 = arith.constant 0 : i32
    %c0_i32_1 = arith.constant 0 : i32
    return %c0_i32, %c0_i32_0 : i32, i32
  }
  func.func @transform_6(%arg0: i32) -> (i32, i32) {
    %c0_i32 = arith.constant 0 : i32
    %c0_i32_0 = arith.constant 0 : i32
    %c0_i32_1 = arith.constant 0 : i32
    return %c0_i32, %c0_i32_0 : i32, i32
  }
  func.func @transform_7(%arg0: i32) -> (i32, i32) {
    %c0_i32 = arith.constant 0 : i32
    %c0_i32_0 = arith.constant 0 : i32
    %c0_i32_1 = arith.constant 0 : i32
    return %c0_i32, %c0_i32_0 : i32, i32
  }
  func.func @transform_8(%arg0: i32) -> (i32, i32) {
    %c0_i32 = arith.constant 0 : i32
    %c0_i32_0 = arith.constant 0 : i32
    return %arg0, %c0_i32 : i32, i32
  }
}

</mosaic_0001>

<bundles_post_ra>
// kernel: _lambda_.1
= control target key start
LH: loop header
LB: loop body
LE: loop exit
PB: predicated region body
PF: predicated region fallthrough
CT: control target
= control target key end

     0   :  { %13 = vsyncpa [#allocation3], 0  ;;  %s1646_s27 = smov 0   ;;  %s2060_s0 = inlined_call_operand.vmem [shape: f32[1,2], index: 0, kind: input, shape index: {}]   ;;  %s2061_s1 = inlined_call_operand.vmem [shape: f32[256,2], index: 1, kind: input, shape index: {}]   ;;  %s2062_s2 = inlined_call_operand.vmem [shape: f32[2,128], index: 2, kind: input, shape index: {}]   ;;  %s2063_s3 = inlined_call_operand.vmem [shape: f32[1,128], index: 3, kind: input, shape index: {}]   ;;  %s2064_s4 = inlined_call_operand.vmem [shape: f32[128,128], index: 4, kind: input, shape index: {}]   ;;  %s2065_s5 = inlined_call_operand.vmem [shape: f32[1,128], index: 5, kind: input, shape index: {}]   ;;  %s2066_s6 = inlined_call_operand.vmem [shape: f32[128,128], index: 6, kind: input, shape index: {}]   ;;  %s2067_s7 = inlined_call_operand.vmem [shape: f32[1,128], index: 7, kind: input, shape index: {}]   ;;  %s2068_s8 = inlined_call_operand.vmem [shape: f32[256,128], index: 8, kind: output, shape index: {}]  }
   0x1 LB: > { %s1275_s28 = sadd.s32 4294967295, %s1596_s27   ;;  %p1277_p0 = scmp.ge.s32.totalorder %s1596_s27, 1  ;;  %s1596_s27 = sphi %s1646_s27, %s19_s27  }
   0x2   : > { %p223_p1 = scmp.lt.s32.totalorder %s1596_s27, 3  ;;  %s236_s9 = sshll.u32 %s2060_s0, 4  ;;  %s237_s9 = int_to_ptr.vmem [resolvable:$true] %s236_s9 }
   0x3   : > { %p1661_p3 = scmp.eq.s32.totalorder %s1275_s28, 0  ;;  %s1571_s12 = scalar_lea.vmem %s237_s9, 16 }
   0x4   : > { %p1657_p2 = pnand %p1277_p0, %p223_p1  ;;  %p1572_p6 = scmp.ne.s32.totalorder %s237_s9, %s1571_s12 }
   0x5   : > { %p1579_p10 = scmp.lt.s32.totalorder %s237_s9, %s237_s9  ;;  %p1580_p11 = scmp.lt.s32.totalorder %s1571_s12, %s1571_s12 }
   0x6   : > { %p1472_p4 = pneg %p1657_p2 }
   0x7   : > { %p1581_p12 = por %p1580_p11, %p1579_p10 }
   0x8   : > { %p1473_p5 = pnand %p1661_p3, %p1472_p4 }
   0xa   : > { %p1573_p7 = pneg %p1473_p5 }
   0xc   : > { %p1574_p8 = pnand %p1573_p7, %p1572_p6 }
   0xe   : > { %p1575_p9 = pneg %p1574_p8 }
  0x10   : > { %p1582_p13 = pnand %p1581_p12, %p1575_p9 }
  0x12   : > { %1585 = shalt.err (!%p1582_p13)
}
  0x13   : > { %s1598_s13 = smov [#allocation2]   ;;  %276 = sbr.rel (%p1657_p2) target bundleno = 967 (0x3c7), region = 52 }
  0x14   : > { %1475 = dma.vmem_to_smem (!%p1473_p5), %s237_s9, 16, %s1598_s13, [#allocation3]  }
  0x18   : > { %1591 = dma.done.wait (%p1661_p3), [#allocation3], 16  }
  0x19   : > { %1593 = vsyncadd (%p1661_p3), [#allocation3], 4294967280 }
  0x1a   : > { %282 = sfence }
  0x1b   : > { %s1282_s14 = sshll.u32 %s1275_s28, 4  ;;  %v629_v0 = vld [vmem:[%s2064_s4 + $0x78] sm:$0xff]  ;;  %v1599_v1 = vmov 1   ;;  %v628_v2 = vld [vmem:[%s2064_s4 + $0x70] sm:$0xff]  ;;  %v627_v3 = vld [vmem:[%s2064_s4 + $0x68] sm:$0xff]  ;;  %v1600_v14 = vmov 0   ;;  %v423_v46 = vlaneseq }
  0x1c   : > { %1491 = vset.pattern.permute.xlu0 %v1599_v1  ;;  %1489 = vset.pattern.permute.xlu1 %v1599_v1  ;;  %p312_p0 = scmp.lt.s32.totalorder %s1282_s14, 31  ;;  %v626_v4 = vld [vmem:[%s2064_s4 + $0x60] sm:$0xff]  ;;  %v625_v7 = vld [vmem:[%s2064_s4 + $0x58] sm:$0xff]  ;;  %v624_v10 = vld [vmem:[%s2064_s4 + $0x50] sm:$0xff]  ;;  %s323_s19 = sld [smem:[#allocation2]] }
  0x1d   : > { %1356 = vmatprep.subr.mxu0 %v629_v0  ;;  %v623_v13 = vld [vmem:[%s2064_s4 + $0x48] sm:$0xff]  ;;  %v622_v15 = vld [vmem:[%s2064_s4 + $0x40] sm:$0xff]  ;;  %v621_v16 = vld [vmem:[%s2064_s4 + $0x38] sm:$0xff]  ;;  %v424_v49 = vshrl.u32 %v423_v46, 7  ;;  %s1286_s11 = sld [smem:[#allocation2 + $0x1]] }
  0x1e   : > { %s2072_s14 = smov (!%p312_p0, %s1282_s14), 31  ;;  %1357 = vmatpush3.msra.mxu0 %v629_v0  ;;  %v620_v17 = vld [vmem:[%s2064_s4 + $0x30] sm:$0xff]  ;;  %v619_v18 = vld [vmem:[%s2064_s4 + $0x28] sm:$0xff]  ;;  %v618_v20 = vld [vmem:[%s2064_s4 + $0x20] sm:$0xff] }
  0x1f   : > { %1358 = vmatprep.subr.mxu0 %v628_v2  ;;  %s1283_s21 = sshll.u32 %s2072_s14, 3  ;;  %v617_v21 = vld [vmem:[%s2064_s4 + $0x18] sm:$0xff]  ;;  %v616_v22 = vld [vmem:[%s2064_s4 + $0x10] sm:$0xff]  ;;  %v615_v24 = vld [vmem:[%s2064_s4 + $0x8] sm:$0xff]  ;;  %v531_v52 = vsub.s32 1, %v424_v49  ;;  %v425_v54 = vsub.s32 0, %v424_v49 }
  0x20   : > { %1359 = vmatpush3.msra.mxu0 %v628_v2  ;;  %s1694_s24 = scalar_lea.vmem %s2061_s1, %s1283_s21  ;;  %v614_v25 = vld [vmem:[%s2064_s4] sm:$0xff]  ;;  %v846_v34 = vld [vmem:[%s2066_s6 + $0x78] sm:$0xff]  ;;  %v845_v35 = vld [vmem:[%s2066_s6 + $0x70] sm:$0xff] }
  0x21   : > { %1360 = vmatprep.subr.mxu0 %v627_v3  ;;  %v327_v5 = vld [vmem:[%s1694_s24 + $0x10] sm:$0xff]  ;;  %v325_v6 = vld [vmem:[%s1694_s24] sm:$0xff]  ;;  %v326_v9 = vld [vmem:[%s1694_s24 + $0x8] sm:$0xff]  ;;  %1412 = vmatprep.subr.mxu1 %v846_v34 }
  0x22   : > { %1361 = vmatpush3.msra.mxu0 %v627_v3  ;;  %474 = vperm.xlu0 %1491, %v327_v5   ;;  %v331_v8 = vld [vmem:[%s1694_s24 + $0x30] sm:$0xff]  ;;  %v328_v12 = vld [vmem:[%s1694_s24 + $0x18] sm:$0xff]  ;;  %v329_v19 = vld [vmem:[%s1694_s24 + $0x20] sm:$0xff]  ;;  %v1821_v3 = vstv %s323_s19 }
  0x23   : > { %466 = vperm.xlu1 %1489, %v325_v6   ;;  %1362 = vmatprep.subr.mxu0 %v626_v4  ;;  %v335_v11 = vld [vmem:[%s1694_s24 + $0x50] sm:$0xff]  ;;  %v330_v23 = vld [vmem:[%s1694_s24 + $0x28] sm:$0xff]  ;;  %v332_v27 = vld [vmem:[%s1694_s24 + $0x38] sm:$0xff] }
  0x24   : > { %1363 = vmatpush3.msra.mxu0 %v626_v4  ;;  %v334_v26 = vld [vmem:[%s1694_s24 + $0x48] sm:$0xff]  ;;  %v333_v29 = vld [vmem:[%s1694_s24 + $0x40] sm:$0xff]  ;;  %v339_v30 = vld [vmem:[%s1694_s24 + $0x70] sm:$0xff]  ;;  %1413 = vmatpush3.msra.mxu1 %v846_v34 }
  0x25   : > { %1364 = vmatprep.subr.mxu0 %v625_v7  ;;  %v338_v28 = vld [vmem:[%s1694_s24 + $0x68] sm:$0xff]  ;;  %v336_v31 = vld [vmem:[%s1694_s24 + $0x58] sm:$0xff]  ;;  %v337_v32 = vld [vmem:[%s1694_s24 + $0x60] sm:$0xff]  ;;  %1414 = vmatprep.subr.mxu1 %v845_v35 }
  0x26   : > { %490 = vperm.xlu0 %1491, %v331_v8   ;;  %1365 = vmatpush3.msra.mxu0 %v625_v7  ;;  %v340_v33 = vld [vmem:[%s1694_s24 + $0x78] sm:$0xff]  ;;  %v844_v36 = vld [vmem:[%s2066_s6 + $0x68] sm:$0xff]  ;;  %v843_v37 = vld [vmem:[%s2066_s6 + $0x60] sm:$0xff]  ;;  %s2023_s24 = scalar_lea.vmem %s2068_s8, %s1283_s21 }
  0x27   : > { %470 = vperm.xlu1 %1489, %v326_v9   ;;  %1366 = vmatprep.subr.mxu0 %v624_v10  ;;  %v842_v38 = vld [vmem:[%s2066_s6 + $0x58] sm:$0xff]  ;;  %v841_v39 = vld [vmem:[%s2066_s6 + $0x50] sm:$0xff]  ;;  %v840_v40 = vld [vmem:[%s2066_s6 + $0x48] sm:$0xff] }
  0x28   : > { %1367 = vmatpush3.msra.mxu0 %v624_v10  ;;  %1415 = vmatpush3.msra.mxu1 %v845_v35  ;;  %v839_v41 = vld [vmem:[%s2066_s6 + $0x40] sm:$0xff]  ;;  %v838_v42 = vld [vmem:[%s2066_s6 + $0x38] sm:$0xff]  ;;  %v837_v43 = vld [vmem:[%s2066_s6 + $0x30] sm:$0xff] }
  0x29   : > { %1368 = vmatprep.subr.mxu0 %v623_v13  ;;  %1416 = vmatprep.subr.mxu1 %v844_v36  ;;  %v836_v44 = vld [vmem:[%s2066_s6 + $0x28] sm:$0xff]  ;;  %v835_v45 = vld [vmem:[%s2066_s6 + $0x20] sm:$0xff] }
  0x2a   : > { %506 = vperm.xlu0 %1491, %v335_v11   ;;  %1369 = vmatpush3.msra.mxu0 %v623_v13  ;;  %v341_v55 = vld [vmem:[%s2062_s2] sm:$0x3] }
  0x2b   : > { %1490 = vset.pattern.permute.xlu1 %v1600_v14  ;;  %1370 = vmatprep.subr.mxu0 %v622_v15  ;;  %v1808_v57 = vrot.slane %v341_v55, %v531_v52  ;;  %v1810_v58 = vrot.slane %v341_v55, %v425_v54  ;;  %v1816_v62 = vld [vmem:[%s2063_s3] ss:$0 sm:$0xff] }
  0x2c   : > { %360 = vperm.xlu1 %1490, %v328_v12   ;;  %1371 = vmatpush3.msra.mxu0 %v622_v15 }
  0x2d   : > { %1372 = vmatprep.subr.mxu0 %v621_v16  ;;  %1417 = vmatpush3.msra.mxu1 %v844_v36 }
  0x2e   : > { %1500 = vset.pattern.permute.xlu0 %v1600_v14  ;;  %1373 = vmatpush3.msra.mxu0 %v621_v16 }
  0x2f   : > { %345 = vperm.xlu0 %1500, %v325_v6   ;;  %1374 = vmatprep.subr.mxu0 %v620_v17 }
  0x30   : > { %1492 = vset.pattern.permute.xlu1 %v1599_v1  ;;  %1375 = vmatpush3.msra.mxu0 %v620_v17 }
  0x31   : > { %478 = vperm.xlu1 %1492, %v328_v12   ;;  %1376 = vmatprep.subr.mxu0 %v619_v18 }
  0x32   : > { %1377 = vmatpush3.msra.mxu0 %v619_v18  ;;  %1418 = vmatprep.subr.mxu1 %v843_v37 }
  0x33   : > { %350 = vperm.xlu0 %1500, %v326_v9   ;;  %1378 = vmatprep.subr.mxu0 %v618_v20 }
  0x34   : > { %1379 = vmatpush3.msra.mxu0 %v618_v20  ;;  %1419 = vmatpush3.msra.mxu1 %v843_v37 }
  0x35   : > { %1493 = vset.pattern.permute.xlu1 %v1600_v14  ;;  %1380 = vmatprep.subr.mxu0 %v617_v21 }
  0x36   : > { %365 = vperm.xlu1 %1493, %v329_v19   ;;  %1381 = vmatpush3.msra.mxu0 %v617_v21 }
  0x37   : > { %355 = vperm.xlu0 %1500, %v327_v5   ;;  %1382 = vmatprep.subr.mxu0 %v616_v22 }
  0x38   : > { %1383 = vmatpush3.msra.mxu0 %v616_v22  ;;  %1420 = vmatprep.subr.mxu1 %v842_v38 }
  0x39   : > { %1384 = vmatprep.subr.mxu0 %v615_v24  ;;  %1421 = vmatpush3.msra.mxu1 %v842_v38 }
  0x3a   : > { %1494 = vset.pattern.permute.xlu1 %v1599_v1  ;;  %1385 = vmatpush3.msra.mxu0 %v615_v24 }
  0x3b   : > { %482 = vperm.xlu1 %1494, %v329_v19   ;;  %370 = vperm.xlu0 %1500, %v330_v23  }
  0x3c   : > { %1386 = vmatprep.subr.mxu0 %v614_v25  ;;  %1422 = vmatprep.subr.mxu1 %v841_v39 }
  0x3d   : > { %1387 = vmatpush3.msra.mxu0 %v614_v25  ;;  %1423 = vmatpush3.msra.mxu1 %v841_v39 }
  0x3e   : > { %1424 = vmatprep.subr.mxu1 %v840_v40 }
  0x3f   : > { %486 = vperm.xlu1 %1494, %v330_v23   ;;  %375 = vperm.xlu0 %1500, %v331_v8  }
  0x40   : > { %1425 = vmatpush3.msra.mxu1 %v840_v40 }
  0x41   : > { %1426 = vmatprep.subr.mxu1 %v839_v41 }
  0x42   : > { %1427 = vmatpush3.msra.mxu1 %v839_v41 }
  0x43   : > { %1495 = vset.pattern.permute.xlu1 %v1600_v14  ;;  %390 = vperm.xlu0 %1500, %v334_v26  }
  0x44   : > { %380 = vperm.xlu1 %1495, %v332_v27   ;;  %1428 = vmatprep.subr.mxu1 %v838_v42 }
  0x45   : > { %1429 = vmatpush3.msra.mxu1 %v838_v42 }
  0x46   : > { %1430 = vmatprep.subr.mxu1 %v837_v43 }
  0x47   : > { %395 = vperm.xlu0 %1500, %v335_v11   ;;  %1431 = vmatpush3.msra.mxu1 %v837_v43 }
  0x48   : > { %1496 = vset.pattern.permute.xlu1 %v1599_v1  ;;  %1432 = vmatprep.subr.mxu1 %v836_v44 }
  0x49   : > { %494 = vperm.xlu1 %1496, %v332_v27   ;;  %1433 = vmatpush3.msra.mxu1 %v836_v44 }
  0x4a   : > { %1434 = vmatprep.subr.mxu1 %v835_v45 }
  0x4b   : > { %410 = vperm.xlu0 %1500, %v338_v28   ;;  %1435 = vmatpush3.msra.mxu1 %v835_v45 }
  0x4d   : > { %1497 = vset.pattern.permute.xlu1 %v1600_v14 }
  0x4e   : > { %385 = vperm.xlu1 %1497, %v333_v29  }
  0x4f   : > { %415 = vperm.xlu0 %1500, %v339_v30  }
  0x52   : > { %1498 = vset.pattern.permute.xlu1 %v1599_v1 }
  0x53   : > { %498 = vperm.xlu1 %1498, %v333_v29   ;;  %1505 = vset.pattern.permute.xlu0 %v1599_v1 }
  0x54   : > { %522 = vperm.xlu0 %1505, %v339_v30  }
  0x57   : > { %502 = vperm.xlu1 %1498, %v334_v26  }
  0x5b   : > { %1499 = vset.pattern.permute.xlu1 %v1600_v14 }
  0x5c   : > { %400 = vperm.xlu1 %1499, %v336_v31  }
  0x60   : > { %1501 = vset.pattern.permute.xlu1 %v1599_v1 }
  0x61   : > { %510 = vperm.xlu1 %1501, %v336_v31  }
  0x65   : > { %1502 = vset.pattern.permute.xlu1 %v1600_v14 }
  0x66   : > { %405 = vperm.xlu1 %1502, %v337_v32  }
  0x6a   : > { %1503 = vset.pattern.permute.xlu1 %v1599_v1 }
  0x6b   : > { %514 = vperm.xlu1 %1503, %v337_v32  }
  0x6f   : > { %518 = vperm.xlu1 %1503, %v338_v28  }
  0x73   : > { %1504 = vset.pattern.permute.xlu1 %v1600_v14 }
  0x74   : > { %420 = vperm.xlu1 %1504, %v340_v33  }
  0x78   : > { %1506 = vset.pattern.permute.xlu1 %v1599_v1 }
  0x79   : > { %526 = vperm.xlu1 %1506, %v340_v33  }
  0x9d   : > { %v475_v48 = vpop.permute.xlu0 %474 }
  0x9e   : > { %v467_v47 = vpop.permute.xlu1 %466  ;;  %v535_v14 = vmul.f32 %v1808_v57, %v475_v48 }
  0x9f   : > { %v533_v63 = vmul.f32 %v1808_v57, %v467_v47 }
  0xa1   : > { %v491_v51 = vpop.permute.xlu0 %490 }
  0xa2   : > { %v471_v50 = vpop.permute.xlu1 %470  ;;  %v539_v36 = vmul.f32 %v1808_v57, %v491_v51 }
  0xa3   : > { %v534_v8 = vmul.f32 %v1808_v57, %v471_v50 }
  0xa5   : > { %v1803_v53 = vpop.permute.xlu0 %506 }
  0xa7   : > { %v361_v56 = vpop.permute.xlu1 %360 }
  0xa8   : > { %v430_v1 = vmul.f32 %v1810_v58, %v361_v56 }
  0xaa   : > { %v346_v59 = vpop.permute.xlu0 %345  ;;  %v452_v11 = vadd.f32 %v1816_v62, %v430_v1 }
  0xab   : > { %v427_v60 = vmul.f32 %v1810_v58, %v346_v59 }
  0xac   : > { %v479_v61 = vpop.permute.xlu1 %478 }
  0xad   : > { %v449_v0 = vadd.f32 %v1816_v62, %v427_v60  ;;  %v536_v6 = vmul.f32 %v1808_v57, %v479_v61 }
  0xae   : > { %v351_v2 = vpop.permute.xlu0 %350 }
  0xaf   : > { %v428_v4 = vmul.f32 %v1810_v58, %v351_v2  ;;  %v549_v5 = vadd.f32 %v533_v63, %v449_v0  ;;  %v552_v18 = vadd.f32 %v536_v6, %v452_v11 }
  0xb1   : > { %v366_v7 = vpop.permute.xlu1 %365  ;;  %v450_v9 = vadd.f32 %v1816_v62, %v428_v4  ;;  %vm565_vm0 = vcmp.ge.f32.partialorder %v549_v5, 0.0  ;;  %v582_v10 = vmul.f32 %v1821_v3, %v549_v5  ;;  %v585_v29 = vmul.f32 %v1821_v3, %v552_v18 }
  0xb2   : > { %v431_v12 = vmul.f32 %v1810_v58, %v366_v7  ;;  %v356_v13 = vpop.permute.xlu0 %355  ;;  %vm568_vm3 = vcmp.ge.f32.partialorder %v552_v18, 0.0  ;;  %v543_v7 = vmul.f32 %v1808_v57, %v1803_v53 }
  0xb3   : > { %v550_v15 = vadd.f32 %v534_v8, %v450_v9  ;;  %v429_v16 = vmul.f32 %v1810_v58, %v356_v13  ;;  %v598_v17 = vsel %vm565_vm0, %v549_v5, %v582_v10  ;;  %v601_v40 = vsel %vm568_vm3, %v552_v18, %v585_v29 }
  0xb4   : > { %1388 = vmatprep.mubr.f32.mxu0 %v598_v17  ;;  %v453_v22 = vadd.f32 %v1816_v62, %v431_v12 }
  0xb5   : > { %v451_v19 = vadd.f32 %v1816_v62, %v429_v16  ;;  %vm566_vm1 = vcmp.ge.f32.partialorder %v550_v15, 0.0  ;;  %v583_v21 = vmul.f32 %v1821_v3, %v550_v15 }
  0xb6   : > { %v483_v20 = vpop.permute.xlu1 %482  ;;  %v371_v24 = vpop.permute.xlu0 %370 }
  0xb7   : > { %v537_v23 = vmul.f32 %v1808_v57, %v483_v20  ;;  %v551_v25 = vadd.f32 %v535_v14, %v451_v19  ;;  %v432_v26 = vmul.f32 %v1810_v58, %v371_v24  ;;  %v599_v27 = vsel %vm566_vm1, %v550_v15, %v583_v21 }
  0xb8   : > { %1389 = vmatmul.mubr.f32.vlgmr.msra.gmra.mxu0 %v599_v27 }
  0xb9   : > { %v553_v28 = vadd.f32 %v537_v23, %v453_v22  ;;  %v454_v30 = vadd.f32 %v1816_v62, %v432_v26  ;;  %vm567_vm2 = vcmp.ge.f32.partialorder %v551_v25, 0.0  ;;  %v584_v32 = vmul.f32 %v1821_v3, %v551_v25 }
  0xba   : > { %v487_v31 = vpop.permute.xlu1 %486  ;;  %v376_v34 = vpop.permute.xlu0 %375 }
  0xbb   : > { %v538_v33 = vmul.f32 %v1808_v57, %v487_v31  ;;  %vm569_vm4 = vcmp.ge.f32.partialorder %v553_v28, 0.0  ;;  %v586_v35 = vmul.f32 %v1821_v3, %v553_v28  ;;  %v433_v37 = vmul.f32 %v1810_v58, %v376_v34 }
  0xbc   : > { %v600_v38 = vsel %vm567_vm2, %v551_v25, %v584_v32 }
  0xbd   : > { %v554_v39 = vadd.f32 %v538_v33, %v454_v30  ;;  %1391 = vmatprep.mubr.f32.mxu0 %v600_v38  ;;  %v602_v41 = vsel %vm569_vm4, %v553_v28, %v586_v35  ;;  %v455_v42 = vadd.f32 %v1816_v62, %v433_v37 }
  0xbe   : > { %1392 = vmatmul.mubr.f32.gmra.mxu0 %v601_v40  ;;  %v391_v46 = vpop.permute.xlu0 %390 }
  0xbf   : > { %1394 = vmatprep.mubr.f32.mxu0 %v602_v41  ;;  %v381_v43 = vpop.permute.xlu1 %380  ;;  %vm570_vm5 = vcmp.ge.f32.partialorder %v554_v39, 0.0  ;;  %v587_v44 = vmul.f32 %v1821_v3, %v554_v39  ;;  %v555_v45 = vadd.f32 %v539_v36, %v455_v42  ;;  %v436_v4 = vmul.f32 %v1810_v58, %v391_v46 }
  0xc0   : > { %v434_v47 = vmul.f32 %v1810_v58, %v381_v43 }
  0xc1   : > { %v603_v48 = vsel %vm570_vm5, %v554_v39, %v587_v44  ;;  %vm571_vm6 = vcmp.ge.f32.partialorder %v555_v45, 0.0  ;;  %v588_v49 = vmul.f32 %v1821_v3, %v555_v45  ;;  %v458_v11 = vadd.f32 %v1816_v62, %v436_v4 }
  0xc2   : > { %1395 = vmatmul.mubr.f32.gmra.mxu0 %v603_v48  ;;  %v456_v52 = vadd.f32 %v1816_v62, %v434_v47  ;;  %v396_v55 = vpop.permute.xlu0 %395 }
  0xc3   : > { %v604_v51 = vsel %vm571_vm6, %v555_v45, %v588_v49  ;;  %v437_v61 = vmul.f32 %v1810_v58, %v396_v55 }
  0xc4   : > { %v495_v50 = vpop.permute.xlu1 %494  ;;  %1397 = vmatprep.mubr.f32.mxu0 %v604_v51 }
  0xc5   : > { %v540_v54 = vmul.f32 %v1808_v57, %v495_v50  ;;  %v459_v1 = vadd.f32 %v1816_v62, %v437_v61  ;;  %v834_v61 = vld [vmem:[%s2066_s6 + $0x18] sm:$0xff] }
  0xc6   : > { %v411_v17 = vpop.permute.xlu0 %410  ;;  %1436 = vmatprep.subr.mxu1 %v834_v61 }
  0xc7   : > { %v556_v56 = vadd.f32 %v540_v54, %v456_v52  ;;  %v559_v9 = vadd.f32 %v543_v7, %v459_v1  ;;  %v440_v36 = vmul.f32 %v1810_v58, %v411_v17  ;;  %1437 = vmatpush3.msra.mxu1 %v834_v61 }
  0xc9   : > { %v386_v59 = vpop.permute.xlu1 %385  ;;  %vm572_vm7 = vcmp.ge.f32.partialorder %v556_v56, 0.0  ;;  %v589_v60 = vmul.f32 %v1821_v3, %v556_v56  ;;  %v592_v16 = vmul.f32 %v1821_v3, %v559_v9  ;;  %vm575_vm10 = vcmp.ge.f32.partialorder %v559_v9, 0.0 }
  0xca   : > { %v435_v63 = vmul.f32 %v1810_v58, %v386_v59  ;;  %v416_v23 = vpop.permute.xlu0 %415  ;;  %v462_v42 = vadd.f32 %v1816_v62, %v440_v36 }
  0xcb   : > { %v605_v0 = vsel %vm572_vm7, %v556_v56, %v589_v60  ;;  %v608_v21 = vsel %vm575_vm10, %v559_v9, %v592_v16  ;;  %v441_v29 = vmul.f32 %v1810_v58, %v416_v23 }
  0xcc   : > { %1398 = vmatmul.mubr.f32.gmra.mxu0 %v605_v0  ;;  %v457_v5 = vadd.f32 %v1816_v62, %v435_v63 }
  0xcd   : > { %v463_v33 = vadd.f32 %v1816_v62, %v441_v29 }
  0xce   : > { %v499_v2 = vpop.permute.xlu1 %498 }
  0xcf   : > { %v541_v6 = vmul.f32 %v1808_v57, %v499_v2  ;;  %v523_v30 = vpop.permute.xlu0 %522  ;;  %v1902_v2 = vstv %s1286_s11 }
  0xd0   : > { %v547_v34 = vmul.f32 %v1808_v57, %v523_v30 }
  0xd1   : > { %v557_v8 = vadd.f32 %v541_v6, %v457_v5 }
  0xd2   : > { %v503_v10 = vpop.permute.xlu1 %502  ;;  %v563_v40 = vadd.f32 %v547_v34, %v463_v33 }
  0xd3   : > { %v542_v12 = vmul.f32 %v1808_v57, %v503_v10  ;;  %vm573_vm8 = vcmp.ge.f32.partialorder %v557_v8, 0.0  ;;  %v590_v13 = vmul.f32 %v1821_v3, %v557_v8 }
  0xd4   : > { %v596_v47 = vmul.f32 %v1821_v3, %v563_v40  ;;  %vm579_vm14 = vcmp.ge.f32.partialorder %v563_v40, 0.0 }
  0xd5   : > { %v558_v14 = vadd.f32 %v542_v12, %v458_v11  ;;  %v606_v15 = vsel %vm573_vm8, %v557_v8, %v590_v13 }
  0xd6   : > { %1400 = vmatprep.mubr.f32.mxu0 %v606_v15  ;;  %v612_v52 = vsel %vm579_vm14, %v563_v40, %v596_v47 }
  0xd7   : > { %v401_v18 = vpop.permute.xlu1 %400  ;;  %vm574_vm9 = vcmp.ge.f32.partialorder %v558_v14, 0.0  ;;  %v591_v53 = vmul.f32 %v1821_v3, %v558_v14 }
  0xd8   : > { %v438_v19 = vmul.f32 %v1810_v58, %v401_v18 }
  0xd9   : > { %v607_v20 = vsel %vm574_vm9, %v558_v14, %v591_v53 }
  0xda   : > { %1401 = vmatmul.mubr.f32.gmra.mxu0 %v607_v20  ;;  %v460_v24 = vadd.f32 %v1816_v62, %v438_v19 }
  0xdb   : > { %1403 = vmatprep.mubr.f32.mxu0 %v608_v21 }
  0xdc   : > { %v511_v22 = vpop.permute.xlu1 %510 }
  0xdd   : > { %v544_v25 = vmul.f32 %v1808_v57, %v511_v22 }
  0xdf   : > { %v560_v26 = vadd.f32 %v544_v25, %v460_v24 }
  0xe1   : > { %v406_v27 = vpop.permute.xlu1 %405  ;;  %vm576_vm11 = vcmp.ge.f32.partialorder %v560_v26, 0.0  ;;  %v593_v28 = vmul.f32 %v1821_v3, %v560_v26 }
  0xe2   : > { %v439_v31 = vmul.f32 %v1810_v58, %v406_v27 }
  0xe3   : > { %v609_v32 = vsel %vm576_vm11, %v560_v26, %v593_v28 }
  0xe4   : > { %1404 = vmatmul.mubr.f32.gmra.mxu0 %v609_v32  ;;  %v461_v37 = vadd.f32 %v1816_v62, %v439_v31 }
  0xe6   : > { %v515_v35 = vpop.permute.xlu1 %514 }
  0xe7   : > { %v545_v38 = vmul.f32 %v1808_v57, %v515_v35 }
  0xe9   : > { %v561_v39 = vadd.f32 %v545_v38, %v461_v37 }
  0xea   : > { %v519_v41 = vpop.permute.xlu1 %518 }
  0xeb   : > { %v546_v43 = vmul.f32 %v1808_v57, %v519_v41  ;;  %vm577_vm12 = vcmp.ge.f32.partialorder %v561_v39, 0.0  ;;  %v594_v44 = vmul.f32 %v1821_v3, %v561_v39 }
  0xed   : > { %v562_v45 = vadd.f32 %v546_v43, %v462_v42  ;;  %v610_v46 = vsel %vm577_vm12, %v561_v39, %v594_v44 }
  0xee   : > { %1406 = vmatprep.mubr.f32.mxu0 %v610_v46 }
  0xef   : > { %v421_v48 = vpop.permute.xlu1 %420  ;;  %vm578_vm13 = vcmp.ge.f32.partialorder %v562_v45, 0.0  ;;  %v595_v49 = vmul.f32 %v1821_v3, %v562_v45 }
  0xf0   : > { %v442_v50 = vmul.f32 %v1810_v58, %v421_v48  ;;  %v833_v58 = vld [vmem:[%s2066_s6 + $0x10] sm:$0xff] }
  0xf1   : > { %v611_v51 = vsel %vm578_vm13, %v562_v45, %v595_v49  ;;  %1438 = vmatprep.subr.mxu1 %v833_v58 }
  0xf2   : > { %1407 = vmatmul.mubr.f32.gmra.mxu0 %v611_v51  ;;  %v464_v55 = vadd.f32 %v1816_v62, %v442_v50  ;;  %1439 = vmatpush3.msra.mxu1 %v833_v58  ;;  %v831_v62 = vld [vmem:[%s2066_s6] sm:$0xff] }
  0xf3   : > { %1409 = vmatprep.mubr.f32.mxu0 %v612_v52 }
  0xf4   : > { %v527_v54 = vpop.permute.xlu1 %526 }
  0xf5   : > { %v548_v56 = vmul.f32 %v1808_v57, %v527_v54  ;;  %v832_v57 = vld [vmem:[%s2066_s6 + $0x8] sm:$0xff] }
  0xf6   : > { %1440 = vmatprep.subr.mxu1 %v832_v57 }
  0xf7   : > { %v564_v59 = vadd.f32 %v548_v56, %v464_v55  ;;  %1441 = vmatpush3.msra.mxu1 %v832_v57 }
  0xf8   : > { %1442 = vmatprep.subr.mxu1 %v831_v62 }
  0xf9   : > { %vm580_vm15 = vcmp.ge.f32.partialorder %v564_v59, 0.0  ;;  %v597_v60 = vmul.f32 %v1821_v3, %v564_v59  ;;  %1443 = vmatpush3.msra.mxu1 %v831_v62  ;;  %v1899_v3 = vld [vmem:[%s2065_s5] ss:$0 sm:$0xff] }
  0xfb   : > { %v613_v63 = vsel %vm580_vm15, %v564_v59, %v597_v60 }
  0xfc   : > { %1410 = vmatmul.mubr.f32.gmra.mxu0 %v613_v63 }
 0x178   : > { %v1390_v0 = vpop.f32.mrf.mxu0 }
 0x179   : > { %v709_v1 = vadd.f32 %v1390_v0, %v1899_v3 }
 0x17a   : > { %v703_v4 = vpop.f32.mrf.mxu0 }
 0x17b   : > { %v704_v5 = vadd.f32 %v1899_v3, %v703_v4  ;;  %v800_v6 = vmul.f32 %v1902_v2, %v709_v1  ;;  %vm783_vm1 = vcmp.ge.f32.partialorder %v709_v1, 0.0  ;;  %v1289_v4 = vld [vmem:[%s2067_s7] ss:$0 sm:$0xff] }
 0x17d   : > { %vm782_vm0 = vcmp.ge.f32.partialorder %v704_v5, 0.0  ;;  %v799_v8 = vmul.f32 %v1902_v2, %v704_v5  ;;  %v816_v13 = vsel %vm783_vm1, %v709_v1, %v800_v6 }
 0x17e   : > { %v1393_v7 = vpop.f32.mrf.mxu0 }
 0x17f   : > { %v719_v9 = vadd.f32 %v1393_v7, %v1899_v3  ;;  %v815_v11 = vsel %vm782_vm0, %v704_v5, %v799_v8 }
 0x180   : > { %v713_v10 = vpop.f32.mrf.mxu0  ;;  %1444 = vmatprep.mubr.f32.mxu1 %v815_v11 }
 0x181   : > { %v714_v12 = vadd.f32 %v1899_v3, %v713_v10  ;;  %v802_v14 = vmul.f32 %v1902_v2, %v719_v9  ;;  %1445 = vmatmul.mubr.f32.vlgmr.msra.gmra.mxu1 %v816_v13  ;;  %vm785_vm3 = vcmp.ge.f32.partialorder %v719_v9, 0.0 }
 0x182   : > { %v1396_v15 = vpop.f32.mrf.mxu0 }
 0x183   : > { %v801_v16 = vmul.f32 %v1902_v2, %v714_v12  ;;  %v729_v17 = vadd.f32 %v1396_v15, %v1899_v3  ;;  %vm784_vm2 = vcmp.ge.f32.partialorder %v714_v12, 0.0  ;;  %v818_v21 = vsel %vm785_vm3, %v719_v9, %v802_v14 }
 0x184   : > { %v723_v18 = vpop.f32.mrf.mxu0 }
 0x185   : > { %v724_v53 = vadd.f32 %v1899_v3, %v723_v18  ;;  %v817_v19 = vsel %vm784_vm2, %v714_v12, %v801_v16  ;;  %v804_v20 = vmul.f32 %v1902_v2, %v729_v17  ;;  %vm787_vm5 = vcmp.ge.f32.partialorder %v729_v17, 0.0 }
 0x186   : > { %1447 = vmatprep.mubr.f32.mxu1 %v817_v19 }
 0x187   : > { %v803_v22 = vmul.f32 %v1902_v2, %v724_v53  ;;  %1448 = vmatmul.mubr.f32.gmra.mxu1 %v818_v21  ;;  %vm786_vm4 = vcmp.ge.f32.partialorder %v724_v53, 0.0  ;;  %v820_v24 = vsel %vm787_vm5, %v729_v17, %v804_v20 }
 0x189   : > { %v819_v23 = vsel %vm786_vm4, %v724_v53, %v803_v22 }
 0x18a   : > { %1450 = vmatprep.mubr.f32.mxu1 %v819_v23 }
 0x18b   : > { %1451 = vmatmul.mubr.f32.gmra.mxu1 %v820_v24 }
 0x18c   : > { %v1399_v25 = vpop.f32.mrf.mxu0 }
 0x18d   : > { %v739_v26 = vadd.f32 %v1399_v25, %v1899_v3 }
 0x18e   : > { %v733_v27 = vpop.f32.mrf.mxu0 }
 0x18f   : > { %v734_v28 = vadd.f32 %v1899_v3, %v733_v27  ;;  %v806_v29 = vmul.f32 %v1902_v2, %v739_v26  ;;  %vm789_vm7 = vcmp.ge.f32.partialorder %v739_v26, 0.0 }
 0x191   : > { %v805_v30 = vmul.f32 %v1902_v2, %v734_v28  ;;  %vm788_vm6 = vcmp.ge.f32.partialorder %v734_v28, 0.0  ;;  %v822_v32 = vsel %vm789_vm7, %v739_v26, %v806_v29 }
 0x193   : > { %v821_v31 = vsel %vm788_vm6, %v734_v28, %v805_v30 }
 0x194   : > { %1453 = vmatprep.mubr.f32.mxu1 %v821_v31 }
 0x195   : > { %1454 = vmatmul.mubr.f32.gmra.mxu1 %v822_v32 }
 0x19a   : > { %v1402_v33 = vpop.f32.mrf.mxu0 }
 0x19b   : > { %v749_v34 = vadd.f32 %v1402_v33, %v1899_v3 }
 0x19c   : > { %v743_v35 = vpop.f32.mrf.mxu0 }
 0x19d   : > { %v744_v36 = vadd.f32 %v1899_v3, %v743_v35  ;;  %v808_v37 = vmul.f32 %v1902_v2, %v749_v34  ;;  %vm791_vm9 = vcmp.ge.f32.partialorder %v749_v34, 0.0 }
 0x19f   : > { %v807_v38 = vmul.f32 %v1902_v2, %v744_v36  ;;  %vm790_vm8 = vcmp.ge.f32.partialorder %v744_v36, 0.0  ;;  %v824_v40 = vsel %vm791_vm9, %v749_v34, %v808_v37 }
 0x1a1   : > { %v823_v39 = vsel %vm790_vm8, %v744_v36, %v807_v38 }
 0x1a2   : > { %1456 = vmatprep.mubr.f32.mxu1 %v823_v39 }
 0x1a3   : > { %1457 = vmatmul.mubr.f32.gmra.mxu1 %v824_v40 }
 0x1a4   : > { %v1405_v41 = vpop.f32.mrf.mxu0 }
 0x1a5   : > { %v759_v42 = vadd.f32 %v1405_v41, %v1899_v3 }
 0x1a6   : > { %v753_v43 = vpop.f32.mrf.mxu0 }
 0x1a7   : > { %v754_v44 = vadd.f32 %v1899_v3, %v753_v43  ;;  %v810_v45 = vmul.f32 %v1902_v2, %v759_v42  ;;  %vm793_vm11 = vcmp.ge.f32.partialorder %v759_v42, 0.0 }
 0x1a9   : > { %v809_v46 = vmul.f32 %v1902_v2, %v754_v44  ;;  %vm792_vm10 = vcmp.ge.f32.partialorder %v754_v44, 0.0  ;;  %v826_v48 = vsel %vm793_vm11, %v759_v42, %v810_v45 }
 0x1ab   : > { %v825_v47 = vsel %vm792_vm10, %v754_v44, %v809_v46 }
 0x1ac   : > { %1459 = vmatprep.mubr.f32.mxu1 %v825_v47 }
 0x1ad   : > { %1460 = vmatmul.mubr.f32.gmra.mxu1 %v826_v48 }
 0x1b2   : > { %v1408_v49 = vpop.f32.mrf.mxu0 }
 0x1b3   : > { %v769_v50 = vadd.f32 %v1408_v49, %v1899_v3 }
 0x1b4   : > { %v763_v51 = vpop.f32.mrf.mxu0 }
 0x1b5   : > { %v764_v52 = vadd.f32 %v1899_v3, %v763_v51  ;;  %v812_v54 = vmul.f32 %v1902_v2, %v769_v50  ;;  %vm795_vm13 = vcmp.ge.f32.partialorder %v769_v50, 0.0 }
 0x1b7   : > { %v811_v55 = vmul.f32 %v1902_v2, %v764_v52  ;;  %vm794_vm12 = vcmp.ge.f32.partialorder %v764_v52, 0.0  ;;  %v828_v59 = vsel %vm795_vm13, %v769_v50, %v812_v54 }
 0x1b9   : > { %v827_v56 = vsel %vm794_vm12, %v764_v52, %v811_v55 }
 0x1ba   : > { %1462 = vmatprep.mubr.f32.mxu1 %v827_v56 }
 0x1bb   : > { %1463 = vmatmul.mubr.f32.gmra.mxu1 %v828_v59 }
 0x1bc   : > { %v1411_v60 = vpop.f32.mrf.mxu0 }
 0x1bd   : > { %v779_v61 = vadd.f32 %v1411_v60, %v1899_v3 }
 0x1be   : > { %v773_v63 = vpop.f32.mrf.mxu0 }
 0x1bf   : > { %v774_v58 = vadd.f32 %v1899_v3, %v773_v63  ;;  %v814_v57 = vmul.f32 %v1902_v2, %v779_v61  ;;  %vm797_vm15 = vcmp.ge.f32.partialorder %v779_v61, 0.0 }
 0x1c1   : > { %v813_v62 = vmul.f32 %v1902_v2, %v774_v58  ;;  %vm796_vm14 = vcmp.ge.f32.partialorder %v774_v58, 0.0  ;;  %v830_v1 = vsel %vm797_vm15, %v779_v61, %v814_v57 }
 0x1c3   : > { %v829_v0 = vsel %vm796_vm14, %v774_v58, %v813_v62 }
 0x1c4   : > { %1465 = vmatprep.mubr.f32.mxu1 %v829_v0 }
 0x1c5   : > { %1466 = vmatmul.mubr.f32.gmra.mxu1 %v830_v1 }
 0x241   : > { %v1446_v5 = vpop.f32.mrf.mxu1 }
 0x242   : > { %v926_v6 = vadd.f32 %v1446_v5, %v1289_v4 }
 0x243   : > { %v920_v7 = vpop.f32.mrf.mxu1 }
 0x244   : > { %v921_v8 = vadd.f32 %v1289_v4, %v920_v7  ;;  %1001 = vmax.xlane.f32.xlu0 %v926_v6 }
 0x246   : > { %999 = vmax.xlane.f32.xlu1 %v921_v8 }
 0x247   : > { %v1449_v3 = vpop.f32.mrf.mxu1 }
 0x248   : > { %v936_v9 = vadd.f32 %v1449_v3, %v1289_v4 }
 0x249   : > { %v930_v10 = vpop.f32.mrf.mxu1 }
 0x24a   : > { %v931_v2 = vadd.f32 %v1289_v4, %v930_v10  ;;  %1005 = vmax.xlane.f32.xlu1 %v936_v9 }
 0x24b   : > { %v1452_v11 = vpop.f32.mrf.mxu1 }
 0x24c   : > { %v946_v12 = vadd.f32 %v1452_v11, %v1289_v4  ;;  %1003 = vmax.xlane.f32.xlu0 %v931_v2 }
 0x24d   : > { %v940_v13 = vpop.f32.mrf.mxu1 }
 0x24e   : > { %v941_v14 = vadd.f32 %v1289_v4, %v940_v13  ;;  %1009 = vmax.xlane.f32.xlu1 %v946_v12 }
 0x250   : > { %1007 = vmax.xlane.f32.xlu0 %v941_v14 }
 0x255   : > { %v1455_v15 = vpop.f32.mrf.mxu1 }
 0x256   : > { %v956_v16 = vadd.f32 %v1455_v15, %v1289_v4 }
 0x257   : > { %v950_v17 = vpop.f32.mrf.mxu1 }
 0x258   : > { %v951_v18 = vadd.f32 %v1289_v4, %v950_v17  ;;  %1013 = vmax.xlane.f32.xlu1 %v956_v16 }
 0x25a   : > { %1011 = vmax.xlane.f32.xlu0 %v951_v18 }
 0x263   : > { %v1458_v53 = vpop.f32.mrf.mxu1 }
 0x264   : > { %v1938_v19 = vadd.f32 %v1458_v53, %v1289_v4 }
 0x265   : > { %v960_v20 = vpop.f32.mrf.mxu1 }
 0x266   : > { %v1940_v21 = vadd.f32 %v1289_v4, %v960_v20  ;;  %1017 = vmax.xlane.f32.xlu1 %v1938_v19 }
 0x268   : > { %1015 = vmax.xlane.f32.xlu0 %v1940_v21 }
 0x26d   : > { %v1461_v22 = vpop.f32.mrf.mxu1 }
 0x26e   : > { %v1944_v23 = vadd.f32 %v1461_v22, %v1289_v4 }
 0x26f   : > { %v970_v24 = vpop.f32.mrf.mxu1 }
 0x270   : > { %v1946_v25 = vadd.f32 %v1289_v4, %v970_v24  ;;  %1021 = vmax.xlane.f32.xlu1 %v1944_v23 }
 0x272   : > { %1019 = vmax.xlane.f32.xlu0 %v1946_v25 }
 0x27b   : > { %v1464_v26 = vpop.f32.mrf.mxu1 }
 0x27c   : > { %v1950_v27 = vadd.f32 %v1464_v26, %v1289_v4 }
 0x27d   : > { %v980_v28 = vpop.f32.mrf.mxu1 }
 0x27e   : > { %v1952_v29 = vadd.f32 %v1289_v4, %v980_v28  ;;  %1025 = vmax.xlane.f32.xlu1 %v1950_v27 }
 0x280   : > { %1023 = vmax.xlane.f32.xlu0 %v1952_v29 }
 0x285   : > { %v1467_v30 = vpop.f32.mrf.mxu1 }
 0x286   : > { %v1956_v31 = vadd.f32 %v1467_v30, %v1289_v4 }
 0x287   : > { %v990_v32 = vpop.f32.mrf.mxu1 }
 0x288   : > { %v1958_v33 = vadd.f32 %v1289_v4, %v990_v32  ;;  %1029 = vmax.xlane.f32.xlu1 %v1956_v31 }
 0x28a   : > { %1027 = vmax.xlane.f32.xlu0 %v1958_v33 }
 0x2cd   : > { %v1002_v34 = vpop.xlane.xlu0 %1001 }
 0x2ce   : > { %v1032_v35 = vsub.f32 %v926_v6, %v1002_v34 }
 0x2cf   : > { %v1000_v36 = vpop.xlane.xlu1 %999 }
 0x2d0   : > { %v1049_v37 = vmul.f32 1.442695, %v1032_v35  ;;  %v1031_v38 = vsub.f32 %v921_v8, %v1000_v36 }
 0x2d2   : > { %1507 = vpow2.f32 %v1049_v37  ;;  %v1047_v39 = vmul.f32 1.442695, %v1031_v38 }
 0x2d3   : > { %v1006_v40 = vpop.xlane.xlu1 %1005 }
 0x2d4   : > { %1509 = vpow2.f32 %v1047_v39  ;;  %v1034_v41 = vsub.f32 %v936_v9, %v1006_v40 }
 0x2d5   : > { %v1004_v42 = vpop.xlane.xlu0 %1003 }
 0x2d6   : > { %v1033_v43 = vsub.f32 %v931_v2, %v1004_v42  ;;  %v1053_v44 = vmul.f32 1.442695, %v1034_v41 }
 0x2d7   : > { %v1010_v46 = vpop.xlane.xlu1 %1009 }
 0x2d8   : > { %v1051_v45 = vmul.f32 1.442695, %v1033_v43  ;;  %1511 = vpow2.f32 %v1053_v44  ;;  %v1036_v47 = vsub.f32 %v946_v12, %v1010_v46 }
 0x2d9   : > { %v1008_v48 = vpop.xlane.xlu0 %1007 }
 0x2da   : > { %1513 = vpow2.f32 %v1051_v45  ;;  %v1035_v49 = vsub.f32 %v941_v14, %v1008_v48  ;;  %v1057_v50 = vmul.f32 1.442695, %v1036_v47 }
 0x2dc   : > { %v1055_v51 = vmul.f32 1.442695, %v1035_v49  ;;  %1515 = vpow2.f32 %v1057_v50 }
 0x2de   : > { %1517 = vpow2.f32 %v1055_v51 }
 0x2df   : > { %v1962_v52 = vpop.eup %1507 }
 0x2e0   : > { %1081 = vadd.xlane.f32.xlu1 %v1962_v52 }
 0x2e1   : > { %v1014_v54 = vpop.xlane.xlu1 %1013  ;;  %v1965_v55 = vpop.eup %1509 }
 0x2e2   : > { %v1038_v56 = vsub.f32 %v956_v16, %v1014_v54  ;;  %1079 = vadd.xlane.f32.xlu0 %v1965_v55 }
 0x2e3   : > { %v1012_v59 = vpop.xlane.xlu0 %1011 }
 0x2e4   : > { %v1061_v60 = vmul.f32 1.442695, %v1038_v56  ;;  %v1037_v61 = vsub.f32 %v951_v18, %v1012_v59 }
 0x2e5   : > { %v1968_v63 = vpop.eup %1511 }
 0x2e6   : > { %1519 = vpow2.f32 %v1061_v60  ;;  %v1059_v58 = vmul.f32 1.442695, %v1037_v61  ;;  %1085 = vadd.xlane.f32.xlu1 %v1968_v63 }
 0x2e7   : > { %v1970_v57 = vpop.eup %1513 }
 0x2e8   : > { %1521 = vpow2.f32 %v1059_v58  ;;  %1083 = vadd.xlane.f32.xlu0 %v1970_v57 }
 0x2e9   : > { %v1974_v62 = vpop.eup %1515 }
 0x2ea   : > { %1089 = vadd.xlane.f32.xlu1 %v1974_v62 }
 0x2eb   : > { %v1976_v0 = vpop.eup %1517 }
 0x2ec   : > { %1087 = vadd.xlane.f32.xlu0 %v1976_v0 }
 0x2ef   : > { %v1018_v1 = vpop.xlane.xlu1 %1017 }
 0x2f0   : > { %v1040_v4 = vsub.f32 %v1938_v19, %v1018_v1 }
 0x2f1   : > { %v1016_v5 = vpop.xlane.xlu0 %1015 }
 0x2f2   : > { %v1065_v6 = vmul.f32 1.442695, %v1040_v4  ;;  %v1039_v7 = vsub.f32 %v1940_v21, %v1016_v5 }
 0x2f3   : > { %v1982_v8 = vpop.eup %1519 }
 0x2f4   : > { %1523 = vpow2.f32 %v1065_v6  ;;  %v1063_v3 = vmul.f32 1.442695, %v1039_v7  ;;  %1093 = vadd.xlane.f32.xlu1 %v1982_v8 }
 0x2f5   : > { %v1985_v9 = vpop.eup %1521 }
 0x2f6   : > { %1525 = vpow2.f32 %v1063_v3  ;;  %1091 = vadd.xlane.f32.xlu0 %v1985_v9 }
 0x2f9   : > { %v1022_v10 = vpop.xlane.xlu1 %1021 }
 0x2fa   : > { %v1042_v2 = vsub.f32 %v1944_v23, %v1022_v10 }
 0x2fb   : > { %v1020_v11 = vpop.xlane.xlu0 %1019 }
 0x2fc   : > { %v1069_v12 = vmul.f32 1.442695, %v1042_v2  ;;  %v1041_v13 = vsub.f32 %v1946_v25, %v1020_v11 }
 0x2fe   : > { %1527 = vpow2.f32 %v1069_v12  ;;  %v1067_v14 = vmul.f32 1.442695, %v1041_v13 }
 0x300   : > { %1529 = vpow2.f32 %v1067_v14 }
 0x301   : > { %v1990_v15 = vpop.eup %1523 }
 0x302   : > { %1097 = vadd.xlane.f32.xlu1 %v1990_v15 }
 0x303   : > { %v1993_v16 = vpop.eup %1525 }
 0x304   : > { %1095 = vadd.xlane.f32.xlu0 %v1993_v16 }
 0x307   : > { %v1026_v17 = vpop.xlane.xlu1 %1025 }
 0x308   : > { %v1044_v18 = vsub.f32 %v1950_v27, %v1026_v17 }
 0x309   : > { %v1024_v53 = vpop.xlane.xlu0 %1023 }
 0x30a   : > { %v1073_v19 = vmul.f32 1.442695, %v1044_v18  ;;  %v1043_v20 = vsub.f32 %v1952_v29, %v1024_v53 }
 0x30b   : > { %v1998_v21 = vpop.eup %1527 }
 0x30c   : > { %1531 = vpow2.f32 %v1073_v19  ;;  %v1071_v22 = vmul.f32 1.442695, %v1043_v20  ;;  %1101 = vadd.xlane.f32.xlu1 %v1998_v21 }
 0x30d   : > { %v2001_v23 = vpop.eup %1529 }
 0x30e   : > { %1533 = vpow2.f32 %v1071_v22  ;;  %1099 = vadd.xlane.f32.xlu0 %v2001_v23 }
 0x311   : > { %v1030_v24 = vpop.xlane.xlu1 %1029 }
 0x312   : > { %v1046_v25 = vsub.f32 %v1956_v31, %v1030_v24 }
 0x313   : > { %v1028_v26 = vpop.xlane.xlu0 %1027 }
 0x314   : > { %v1077_v27 = vmul.f32 1.442695, %v1046_v25  ;;  %v1045_v28 = vsub.f32 %v1958_v33, %v1028_v26 }
 0x316   : > { %1535 = vpow2.f32 %v1077_v27  ;;  %v1075_v29 = vmul.f32 1.442695, %v1045_v28 }
 0x318   : > { %1537 = vpow2.f32 %v1075_v29 }
 0x319   : > { %v2006_v30 = vpop.eup %1531 }
 0x31a   : > { %1105 = vadd.xlane.f32.xlu1 %v2006_v30 }
 0x31b   : > { %v2009_v32 = vpop.eup %1533 }
 0x31c   : > { %1103 = vadd.xlane.f32.xlu0 %v2009_v32 }
 0x323   : > { %v2012_v34 = vpop.eup %1535 }
 0x324   : > { %1109 = vadd.xlane.f32.xlu1 %v2012_v34 }
 0x325   : > { %v2015_v31 = vpop.eup %1537 }
 0x326   : > { %1107 = vadd.xlane.f32.xlu0 %v2015_v31 }
 0x369   : > { %v1082_v33 = vpop.xlane.xlu1 %1081 }
 0x36a   : > { %1539 = vrcp.f32 %v1082_v33 }
 0x36b   : > { %v1080_v35 = vpop.xlane.xlu0 %1079 }
 0x36c   : > { %1541 = vrcp.f32 %v1080_v35 }
 0x36f   : > { %v1086_v36 = vpop.xlane.xlu1 %1085 }
 0x370   : > { %1543 = vrcp.f32 %v1086_v36 }
 0x371   : > { %v1084_v37 = vpop.xlane.xlu0 %1083 }
 0x372   : > { %1545 = vrcp.f32 %v1084_v37 }
 0x373   : > { %v1090_v38 = vpop.xlane.xlu1 %1089 }
 0x374   : > { %1547 = vrcp.f32 %v1090_v38 }
 0x375   : > { %v1088_v39 = vpop.xlane.xlu0 %1087 }
 0x376   : > { %1549 = vrcp.f32 %v1088_v39 }
 0x377   : > { %v1540_v40 = vpop.eup %1539 }
 0x378   : > { %v1128_v41 = vmul.f32 %v1540_v40, %v1082_v33 }
 0x379   : > { %v1542_v42 = vpop.eup %1541 }
 0x37a   : > { %v1144_v43 = vsub.f32 2.0, %v1128_v41  ;;  %v1127_v44 = vmul.f32 %v1542_v42, %v1080_v35 }
 0x37c   : > { %v1160_v45 = vmul.f32 %v1540_v40, %v1144_v43  ;;  %v1143_v46 = vsub.f32 2.0, %v1127_v44 }
 0x37d   : > { %v1094_v47 = vpop.xlane.xlu1 %1093  ;;  %v1544_v48 = vpop.eup %1543 }
 0x37e   : > { %1551 = vrcp.f32 %v1094_v47  ;;  %v1176_v50 = vmul.f32 %v1962_v52, %v1160_v45  ;;  %v1159_v51 = vmul.f32 %v1542_v42, %v1143_v46  ;;  %v1130_v54 = vmul.f32 %v1544_v48, %v1086_v36 }
 0x37f   : > { %v1546_v49 = vpop.eup %1545  ;;  %v1092_v56 = vpop.xlane.xlu0 %1091 }
 0x380   : > { %v1129_v59 = vmul.f32 %v1546_v49, %v1084_v37  ;;  %1553 = vrcp.f32 %v1092_v56  ;;  %1192 = vst [vmem:[%s2023_s24 + $0x8] sm:$0xff] %v1176_v50  ;;  %v1175_v60 = vmul.f32 %v1965_v55, %v1159_v51  ;;  %v1146_v61 = vsub.f32 2.0, %v1130_v54 }
 0x381   : > { %v1548_v58 = vpop.eup %1547 }
 0x382   : > { %v1145_v1 = vsub.f32 2.0, %v1129_v59  ;;  %1191 = vst [vmem:[%s2023_s24] sm:$0xff] %v1175_v60  ;;  %v1162_v5 = vmul.f32 %v1544_v48, %v1146_v61  ;;  %v1132_v6 = vmul.f32 %v1548_v58, %v1090_v38 }
 0x383   : > { %v1550_v4 = vpop.eup %1549 }
 0x384   : > { %v1161_v52 = vmul.f32 %v1546_v49, %v1145_v1  ;;  %v1131_v7 = vmul.f32 %v1550_v4, %v1088_v39  ;;  %v1178_v3 = vmul.f32 %v1968_v63, %v1162_v5  ;;  %v1148_v10 = vsub.f32 2.0, %v1132_v6 }
 0x386   : > { %v1177_v2 = vmul.f32 %v1970_v57, %v1161_v52  ;;  %v1147_v11 = vsub.f32 2.0, %v1131_v7  ;;  %1194 = vst [vmem:[%s2023_s24 + $0x18] sm:$0xff] %v1178_v3  ;;  %v1164_v55 = vmul.f32 %v1548_v58, %v1148_v10 }
 0x388   : > { %1193 = vst [vmem:[%s2023_s24 + $0x10] sm:$0xff] %v1177_v2  ;;  %v1163_v12 = vmul.f32 %v1550_v4, %v1147_v11  ;;  %v1180_v13 = vmul.f32 %v1974_v62, %v1164_v55 }
 0x38a   : > { %v1179_v14 = vmul.f32 %v1976_v0, %v1163_v12  ;;  %1196 = vst [vmem:[%s2023_s24 + $0x28] sm:$0xff] %v1180_v13 }
 0x38b   : > { %v1552_v17 = vpop.eup %1551  ;;  %v1098_v18 = vpop.xlane.xlu1 %1097 }
 0x38c   : > { %1195 = vst [vmem:[%s2023_s24 + $0x20] sm:$0xff] %v1179_v14  ;;  %v1134_v53 = vmul.f32 %v1552_v17, %v1094_v47  ;;  %1555 = vrcp.f32 %v1098_v18 }
 0x38d   : > { %v1554_v63 = vpop.eup %1553  ;;  %v1096_v19 = vpop.xlane.xlu0 %1095 }
 0x38e   : > { %v1150_v57 = vsub.f32 2.0, %v1134_v53  ;;  %v1133_v20 = vmul.f32 %v1554_v63, %v1092_v56  ;;  %1557 = vrcp.f32 %v1096_v19 }
 0x390   : > { %v1166_v22 = vmul.f32 %v1552_v17, %v1150_v57  ;;  %v1149_v24 = vsub.f32 2.0, %v1133_v20 }
 0x392   : > { %v1182_v25 = vmul.f32 %v1982_v8, %v1166_v22  ;;  %v1165_v62 = vmul.f32 %v1554_v63, %v1149_v24 }
 0x394   : > { %1198 = vst [vmem:[%s2023_s24 + $0x38] sm:$0xff] %v1182_v25  ;;  %v1181_v0 = vmul.f32 %v1985_v9, %v1165_v62 }
 0x395   : > { %v1102_v26 = vpop.xlane.xlu1 %1101 }
 0x396   : > { %1197 = vst [vmem:[%s2023_s24 + $0x30] sm:$0xff] %v1181_v0  ;;  %1559 = vrcp.f32 %v1102_v26 }
 0x397   : > { %v1100_v27 = vpop.xlane.xlu0 %1099 }
 0x398   : > { %1561 = vrcp.f32 %v1100_v27 }
 0x399   : > { %v1556_v28 = vpop.eup %1555 }
 0x39a   : > { %v1136_v29 = vmul.f32 %v1556_v28, %v1098_v18 }
 0x39b   : > { %v1558_v33 = vpop.eup %1557 }
 0x39c   : > { %v1152_v35 = vsub.f32 2.0, %v1136_v29  ;;  %v1135_v36 = vmul.f32 %v1558_v33, %v1096_v19 }
 0x39e   : > { %v1168_v37 = vmul.f32 %v1556_v28, %v1152_v35  ;;  %v1151_v38 = vsub.f32 2.0, %v1135_v36 }
 0x3a0   : > { %v1184_v8 = vmul.f32 %v1990_v15, %v1168_v37  ;;  %v1167_v39 = vmul.f32 %v1558_v33, %v1151_v38 }
 0x3a2   : > { %1200 = vst [vmem:[%s2023_s24 + $0x48] sm:$0xff] %v1184_v8  ;;  %v1183_v9 = vmul.f32 %v1993_v16, %v1167_v39 }
 0x3a3   : > { %v1560_v40 = vpop.eup %1559  ;;  %v1106_v41 = vpop.xlane.xlu1 %1105 }
 0x3a4   : > { %1199 = vst [vmem:[%s2023_s24 + $0x40] sm:$0xff] %v1183_v9  ;;  %v1138_v42 = vmul.f32 %v1560_v40, %v1102_v26  ;;  %1563 = vrcp.f32 %v1106_v41 }
 0x3a5   : > { %v1562_v43 = vpop.eup %1561  ;;  %v1104_v44 = vpop.xlane.xlu0 %1103 }
 0x3a6   : > { %v1154_v45 = vsub.f32 2.0, %v1138_v42  ;;  %v1137_v46 = vmul.f32 %v1562_v43, %v1100_v27  ;;  %1565 = vrcp.f32 %v1104_v44 }
 0x3a8   : > { %v1170_v47 = vmul.f32 %v1560_v40, %v1154_v45  ;;  %v1153_v48 = vsub.f32 2.0, %v1137_v46 }
 0x3aa   : > { %v1186_v15 = vmul.f32 %v1998_v21, %v1170_v47  ;;  %v1169_v49 = vmul.f32 %v1562_v43, %v1153_v48 }
 0x3ac   : > { %1202 = vst [vmem:[%s2023_s24 + $0x58] sm:$0xff] %v1186_v15  ;;  %v1185_v16 = vmul.f32 %v2001_v23, %v1169_v49 }
 0x3ad   : > { %v1110_v50 = vpop.xlane.xlu1 %1109 }
 0x3ae   : > { %1201 = vst [vmem:[%s2023_s24 + $0x50] sm:$0xff] %v1185_v16  ;;  %1567 = vrcp.f32 %v1110_v50 }
 0x3af   : > { %v1108_v51 = vpop.xlane.xlu0 %1107 }
 0x3b0   : > { %1569 = vrcp.f32 %v1108_v51 }
 0x3b1   : > { %v1564_v54 = vpop.eup %1563 }
 0x3b2   : > { %v1140_v56 = vmul.f32 %v1564_v54, %v1106_v41 }
 0x3b3   : > { %v1566_v59 = vpop.eup %1565 }
 0x3b4   : > { %v1156_v60 = vsub.f32 2.0, %v1140_v56  ;;  %v1139_v61 = vmul.f32 %v1566_v59, %v1104_v44 }
 0x3b6   : > { %v1172_v58 = vmul.f32 %v1564_v54, %v1156_v60  ;;  %v1155_v1 = vsub.f32 2.0, %v1139_v61 }
 0x3b8   : > { %v1188_v21 = vmul.f32 %v2006_v30, %v1172_v58  ;;  %v1171_v4 = vmul.f32 %v1566_v59, %v1155_v1 }
 0x3ba   : > { %1204 = vst [vmem:[%s2023_s24 + $0x68] sm:$0xff] %v1188_v21  ;;  %v1187_v23 = vmul.f32 %v2009_v32, %v1171_v4 }
 0x3bb   : > { %v1568_v5 = vpop.eup %1567 }
 0x3bc   : > { %1203 = vst [vmem:[%s2023_s24 + $0x60] sm:$0xff] %v1187_v23  ;;  %v1142_v6 = vmul.f32 %v1568_v5, %v1110_v50 }
 0x3bd   : > { %v1570_v52 = vpop.eup %1569 }
 0x3be   : > { %v1158_v7 = vsub.f32 2.0, %v1142_v6  ;;  %v1141_v3 = vmul.f32 %v1570_v52, %v1108_v51 }
 0x3c0   : > { %v1174_v10 = vmul.f32 %v1568_v5, %v1158_v7  ;;  %v1157_v2 = vsub.f32 2.0, %v1141_v3 }
 0x3c2   : > { %v1190_v11 = vmul.f32 %v2012_v34, %v1174_v10  ;;  %v1173_v55 = vmul.f32 %v1570_v52, %v1157_v2 }
 0x3c4   : > { %1206 = vst [vmem:[%s2023_s24 + $0x78] sm:$0xff] %v1190_v11  ;;  %v1189_v12 = vmul.f32 %v2015_v31, %v1173_v55 }
 0x3c6   : > { %1205 = vst [vmem:[%s2023_s24 + $0x70] sm:$0xff] %v1189_v12 }
 0x3c7 PF: > { %s19_s27 = sadd.s32 1, %s1596_s27  }
 0x3c8   : > { %p16_p1 = scmp.ge.s32.totalorder %s19_s27, 4  }
 0x3ca   :  { %18 = sbr.rel (!%p16_p1) target bundleno = 1 (0x1), region = 87 }
 0x3cf   :  { %1229 = vsyncpa [#allocation3], 1 }
 0x3d0   :  { %1231 = vsyncpa [#allocation3 + $0x1], 1 }

</bundles_post_ra>
